<compile_context>
chip_gen: v5e
topology: v5e:2x2
jax: 0.10.0
libtpu: 0.0.40
codegen_flags: <defaults>
</compile_context>

<pallas_src>
import functools

import jax
import jax.numpy as jnp
from jax.experimental import pallas as pl
from jax.experimental.pallas import tpu as pltpu

_LANE = 128     # lane width (last dim)
_SUBLANE = 8    # sublane width (second-to-last dim)


def _round_up(x, m):
    return ((x + m - 1) // m) * m


def _vmem_capacity_bytes():
    try:
        return int(pltpu.get_tpu_info().vmem_capacity_bytes)
    except Exception:
        return 64 << 20  # conservative default: v7x per-TensorCore VMEM


def _vmem_budget_bytes():
    # Leave ~15% headroom under physical VMEM for Mosaic internal scratch.
    return int(_vmem_capacity_bytes() * 0.85)


# --------------------------------------------------------------------------------------
# Fused path: whole MLP in one pallas_call, weights VMEM-resident, grid over batch tiles.
# --------------------------------------------------------------------------------------
def _fused_mlp_kernel(*refs, num_layers: int):
    """refs = (x, w0, b0, ..., w_{L-1}, b_{L-1}, out); one batch tile, all layers fused.

    x_ref: [tm, In_pad]   w_i: [in_i_pad, out_i_pad] (bf16)   b_i: [1, out_i_pad] (f32)
    Inter-layer activation h never leaves vregs/VMEM.  MXU operands bf16, accumulation f32.
    """
    x_ref = refs[0]
    o_ref = refs[1 + 2 * num_layers]

    h = x_ref[...]
    for i in range(num_layers):
        w = refs[1 + 2 * i][...]
        b = refs[2 + 2 * i][...]
        y = jnp.dot(h.astype(w.dtype), w, preferred_element_type=jnp.float32)
        y = y + b.astype(jnp.float32)
        if i < num_layers - 1:
            y = jnp.maximum(y, 0.0)
        h = y
    o_ref[...] = h.astype(o_ref.dtype)


def _fused_mlp_call(x_pad, padded_params, *, out_dim_pad, tm_eff, vmem_limit,
                    weight_buffer_count):
    B, in_pad = x_pad.shape
    num_layers = len(padded_params)
    B_pad = _round_up(B, tm_eff)
    if B_pad != B:
        x_pad = jnp.pad(x_pad, ((0, B_pad - B), (0, 0)))

    res_kwargs = {}
    if weight_buffer_count is not None:
        # Constant index_map -> the block never changes across grid steps, so a single
        # pipeline buffer suffices (default double-buffering on resident weights is waste).
        res_kwargs = dict(pipeline_mode=pl.Buffered(weight_buffer_count))

    flat_params = []
    in_specs = [pl.BlockSpec((tm_eff, in_pad), lambda i: (i, 0))]
    for w_t, b2 in padded_params:
        flat_params.extend([w_t, b2])
        in_specs.append(pl.BlockSpec(w_t.shape, lambda i: (0, 0), **res_kwargs))
        in_specs.append(pl.BlockSpec(b2.shape, lambda i: (0, 0), **res_kwargs))
    out_specs = pl.BlockSpec((tm_eff, out_dim_pad), lambda i: (i, 0))

    kernel = functools.partial(_fused_mlp_kernel, num_layers=num_layers)
    return pl.pallas_call(
        kernel,
        out_shape=jax.ShapeDtypeStruct((B_pad, out_dim_pad), x_pad.dtype),
        grid=(B_pad // tm_eff,),
        in_specs=in_specs,
        out_specs=out_specs,
        compiler_params=pltpu.CompilerParams(
            dimension_semantics=("parallel",),  # batch tiles independent (2 TCs on v7x)
            vmem_limit_bytes=vmem_limit,
        ),
    )(x_pad, *flat_params)


# --------------------------------------------------------------------------------------
# Fallback path: per-layer (tm, tn, tk)-tiled matmul with f32 accumulator, for weight sets
# that do not fit the VMEM budget (hit much earlier on v7x's 64 MiB than on v5e/v6e).
# --------------------------------------------------------------------------------------
def _tiled_linear_kernel(x_ref, w_ref, b_ref, o_ref, acc_ref, *, apply_relu: bool):
    @pl.when(pl.program_id(2) == 0)
    def _():
        acc_ref[...] = jnp.zeros_like(acc_ref)

    acc_ref[...] += jnp.dot(x_ref[...].astype(w_ref.dtype), w_ref[...],
                            preferred_element_type=jnp.float32)

    @pl.when(pl.program_id(2) == pl.num_programs(2) - 1)
    def _():
        y = acc_ref[...] + b_ref[...].astype(jnp.float32)
        if apply_relu:
            y = jnp.maximum(y, 0.0)
        o_ref[...] = y.astype(o_ref.dtype)


def _largest_tile(dim, cap):
    """Largest multiple of 128 that is <= cap and divides dim (dim is a multiple of 128)."""
    t = max(_LANE, (min(dim, cap) // _LANE) * _LANE)
    while dim % t:
        t -= _LANE
    return t


def _tiled_linear_call(x, w, b, *, apply_relu, tm, vmem_budget):
    M, K = x.shape
    _, N = w.shape
    tm = min(_round_up(M, _SUBLANE), tm)
    M_pad = _round_up(M, tm)
    if M_pad != M:
        x = jnp.pad(x, ((0, M_pad - M), (0, 0)))
    tn = _largest_tile(N, 256)
    tk = _largest_tile(K, 512)

    x_bytes = x.dtype.itemsize
    w_bytes = w.dtype.itemsize
    need = (2 * (tm * tk * x_bytes + tk * tn * w_bytes + tn * 4 + tm * tn * x_bytes)
            + tm * tn * 4 + (2 << 20))
    vmem_limit = int(min(max(need, 32 << 20), vmem_budget))

    kernel = functools.partial(_tiled_linear_kernel, apply_relu=apply_relu)
    return pl.pallas_call(
        kernel,
        out_shape=jax.ShapeDtypeStruct((M_pad, N), x.dtype),
        grid=(M_pad // tm, N // tn, K // tk),
        in_specs=[pl.BlockSpec((tm, tk), lambda i, j, k: (i, k)),
                  pl.BlockSpec((tk, tn), lambda i, j, k: (k, j)),
                  pl.BlockSpec((1, tn), lambda i, j, k: (0, j))],
        out_specs=pl.BlockSpec((tm, tn), lambda i, j, k: (i, j)),
        scratch_shapes=[pltpu.VMEM((tm, tn), jnp.float32)],
        compiler_params=pltpu.CompilerParams(
            dimension_semantics=("parallel", "parallel", "arbitrary"),
            vmem_limit_bytes=vmem_limit,
        ),
    )(x, w, b)


# --------------------------------------------------------------------------------------
# Dispatcher
# --------------------------------------------------------------------------------------
def mlp_forward_pallas(x_pad, padded_params, *, out_dim_pad, tm=256,
                       weight_buffer_count=1, force_tiled=False):
    """x_pad: [B, In_pad] lane-padded f32.  Returns [B_pad, Out_pad]."""
    B, in_pad = x_pad.shape
    budget = _vmem_budget_bytes()

    # Batch tile: 8-sublane aligned, default 256 (amortizes ~0.35us grid-step overhead and
    # the 256-wide MXU RHS push on v6e/v7x; small batches shrink it automatically).
    tm_eff = min(_round_up(B, _SUBLANE), tm)
    # Keep >= 2 parallel grid steps when possible so both v7x TensorCores get work.
    if B > _SUBLANE and _round_up(B, tm_eff) // tm_eff < 2:
        tm_eff = _round_up(-(-B // 2), _SUBLANE)

    # Fused-path VMEM estimate: pipelined x/out tiles, resident weights/biases, and the
    # inter-layer activation temporaries (f32 h, f32 y, bf16 matmul operand copy).
    x_bytes = x_pad.dtype.itemsize
    wfactor = weight_buffer_count if weight_buffer_count is not None else 2
    param_bytes = sum(w.size * w.dtype.itemsize + b.size * b.dtype.itemsize
                      for w, b in padded_params)
    max_pad = max([in_pad, out_dim_pad] + [w.shape[1] for w, _ in padded_params])
    need = (2 * tm_eff * (in_pad + out_dim_pad) * x_bytes
            + wfactor * param_bytes
            + tm_eff * max_pad * (4 + 4 + 2)
            + (2 << 20))

    if force_tiled or need > budget:
        # Weights too large to keep VMEM-resident: per-layer tiled matmul (activations
        # round-trip HBM between layers, but each layer keeps the MXU busy).
        h = x_pad
        n = len(padded_params)
        for i, (w, b) in enumerate(padded_params):
            h = _tiled_linear_call(h, w, b, apply_relu=(i < n - 1), tm=tm_eff,
                                   vmem_budget=budget)
        return h

    vmem_limit = int(min(max(need, 32 << 20), budget))
    return _fused_mlp_call(x_pad, padded_params, out_dim_pad=out_dim_pad,
                           tm_eff=tm_eff, vmem_limit=vmem_limit,
                           weight_buffer_count=weight_buffer_count)


class MLPPallas:
    """Mirror of the PyTorch MLP: Linear layers with ReLU on all but the last."""

    def __init__(self, input_dim, hidden_dim, output_dim, num_layers, key, *,
                 param_dtype=jnp.bfloat16, tm=256, weight_buffer_count=1,
                 force_tiled=False, lane_pad=_LANE):
        # lane_pad: feature-dim padding multiple.  128 is always legal; use 256 on v6e/v7x
        # for large dims so odd multiples of 128 don't leave half the 256x256 MXU idle.
        self.num_layers = num_layers
        self.output_dim = output_dim
        self.tm = tm
        self.weight_buffer_count = weight_buffer_count
        self.force_tiled = force_tiled

        h = [hidden_dim] * (num_layers - 1)
        dims_in = [input_dim] + h
        dims_out = h + [output_dim]

        self.params = []         # raw (out, in)/(out,) f32 params -> used by the reference
        self.padded_params = []  # [in_pad, out_pad] param_dtype weights, [1, out_pad] f32 biases
        for n, k in zip(dims_in, dims_out):
            key, kw, kb = jax.random.split(key, 3)
            bound = 1.0 / (n ** 0.5)  # PyTorch nn.Linear default init U(-1/sqrt(in), 1/sqrt(in))
            w = jax.random.uniform(kw, (k, n), jnp.float32, -bound, bound)  # (out, in)
            b = jax.random.uniform(kb, (k,), jnp.float32, -bound, bound)
            self.params.append((w, b))

            in_pad = _round_up(n, lane_pad)
            out_pad = _round_up(k, lane_pad)
            # Transpose + zero-pad + cast ONCE at init (zero rows/cols keep the math exact;
            # bf16 operands run the MXU at full rate and halve resident weight VMEM).
            w_t = jnp.zeros((in_pad, out_pad), jnp.float32).at[:n, :k].set(w.T)
            w_t = w_t.astype(param_dtype)
            b2 = jnp.zeros((1, out_pad), jnp.float32).at[0, :k].set(b)  # bias stays f32
            self.padded_params.append((w_t, b2))

        self.input_dim_pad = _round_up(input_dim, lane_pad)
        self.output_dim_pad = _round_up(output_dim, lane_pad)
        self._forward = jax.jit(self._forward_impl)

    def _forward_impl(self, x, padded_params):
        B, din = x.shape
        x_pad = jnp.pad(x, ((0, 0), (0, self.input_dim_pad - din)))
        out = mlp_forward_pallas(
            x_pad, padded_params, out_dim_pad=self.output_dim_pad, tm=self.tm,
            weight_buffer_count=self.weight_buffer_count, force_tiled=self.force_tiled)
        return out[:B, : self.output_dim]

    def __call__(self, x):
        # Params are passed as jit args (pytree), not closed over, so they aren't baked
        # into the HLO as constants (one HBM copy, faster compiles, donation-friendly).
        return self._forward(x, self.padded_params)


def mlp_reference(params, num_layers, x):
    """Plain-JAX reference matching the PyTorch forward (f32, highest matmul precision)."""
    for i, (w, b) in enumerate(params):
        x = jnp.dot(x, w.T, precision=jax.lax.Precision.HIGHEST) + b
        if i < num_layers - 1:
            x = jnp.maximum(x, 0.0)
    return x


if __name__ == "__main__":
    key = jax.random.PRNGKey(0)
    key, kx, kp = jax.random.split(key, 3)

    batch, input_dim, hidden_dim, output_dim, num_layers = 8, 16, 32, 8, 3
    x = jax.random.normal(kx, (batch, input_dim), jnp.float32)

    cases = [
        dict(param_dtype=jnp.float32,  force_tiled=False, tol=1e-4),  # exact padded-math check
        dict(param_dtype=jnp.bfloat16, force_tiled=False, tol=5e-2),  # default fused bf16 path
        dict(param_dtype=jnp.bfloat16, force_tiled=True,  tol=5e-2),  # big-weight fallback path
    ]

    def run_all(weight_buffer_count):
        for c in cases:
            mlp = MLPPallas(input_dim, hidden_dim, output_dim, num_layers, kp,
                            param_dtype=c["param_dtype"], force_tiled=c["force_tiled"],
                            weight_buffer_count=weight_buffer_count)
            out = jax.block_until_ready(mlp(x))
            ref = mlp_reference(mlp.params, num_layers, x)
            assert out.shape == (batch, output_dim)
            assert jnp.allclose(out, ref, atol=c["tol"], rtol=c["tol"]), (
                f"mismatch vs reference: {c}")

    try:
        run_all(1)
    except AssertionError:
        raise
    except Exception:
        # TODO(synk): some JAX versions may reject single-buffered resident blocks
        # (pl.Buffered(1)); fall back to default double-buffered weight blocks.
        run_all(None)

    print("KERNEL_OK")
</pallas_src>

<mosaic_0001>
module attributes {stable_mosaic.version = 11 : i64} {
  func.func @_fused_mlp_kernel(%arg0: i32, %arg1: memref<8x128xf32, #tpu.memory_space<vmem>>, %arg2: memref<128x128xf32, #tpu.memory_space<vmem>>, %arg3: memref<1x128xf32, #tpu.memory_space<vmem>>, %arg4: memref<128x128xf32, #tpu.memory_space<vmem>>, %arg5: memref<1x128xf32, #tpu.memory_space<vmem>>, %arg6: memref<128x128xf32, #tpu.memory_space<vmem>>, %arg7: memref<1x128xf32, #tpu.memory_space<vmem>>, %arg8: memref<8x128xf32, #tpu.memory_space<vmem>>) attributes {dimension_semantics = [#tpu.dimension_semantics<parallel>], iteration_bounds = array<i64: 1>, scalar_prefetch = 0 : i64, scratch_operands = 0 : i64, tpu.core_type = #tpu.core_type<tc>, window_params = [{transform_indices = @transform_0, window_bounds = array<i64: 8, 128>}, {pipeline_mode = #tpu.pipeline_mode<synchronous>, transform_indices = @transform_1, window_bounds = array<i64: 128, 128>}, {pipeline_mode = #tpu.pipeline_mode<synchronous>, transform_indices = @transform_2, window_bounds = array<i64: 1, 128>}, {pipeline_mode = #tpu.pipeline_mode<synchronous>, transform_indices = @transform_3, window_bounds = array<i64: 128, 128>}, {pipeline_mode = #tpu.pipeline_mode<synchronous>, transform_indices = @transform_4, window_bounds = array<i64: 1, 128>}, {pipeline_mode = #tpu.pipeline_mode<synchronous>, transform_indices = @transform_5, window_bounds = array<i64: 128, 128>}, {pipeline_mode = #tpu.pipeline_mode<synchronous>, transform_indices = @transform_6, window_bounds = array<i64: 1, 128>}, {transform_indices = @transform_7, window_bounds = array<i64: 8, 128>}]} {
    %c0 = arith.constant 0 : index
    %c0_0 = arith.constant 0 : index
    %0 = vector.load %arg1[%c0, %c0_0] : memref<8x128xf32, #tpu.memory_space<vmem>>, vector<8x128xf32>
    %c0_1 = arith.constant 0 : index
    %c0_2 = arith.constant 0 : index
    %1 = vector.load %arg2[%c0_1, %c0_2] : memref<128x128xf32, #tpu.memory_space<vmem>>, vector<128x128xf32>
    %c0_3 = arith.constant 0 : index
    %c0_4 = arith.constant 0 : index
    %2 = vector.load %arg3[%c0_3, %c0_4] : memref<1x128xf32, #tpu.memory_space<vmem>>, vector<1x128xf32>
    %cst = arith.constant dense<0.000000e+00> : vector<8x128xf32>
    %3 = tpu.matmul %0, %1, %cst {dimension_numbers = #tpu.dot_dimension_numbers<[1], [0], [0], [1], [0, 0, 1, 1], [], []>} : vector<8x128xf32>, vector<128x128xf32>, vector<8x128xf32> -> vector<8x128xf32>
    %4 = vector.broadcast %2 : vector<1x128xf32> to vector<8x128xf32>
    %5 = arith.addf %3, %4 : vector<8x128xf32>
    %cst_5 = arith.constant 0.000000e+00 : f32
    %6 = vector.broadcast %cst_5 : f32 to vector<8x128xf32>
    %7 = arith.maximumf %5, %6 : vector<8x128xf32>
    %c0_6 = arith.constant 0 : index
    %c0_7 = arith.constant 0 : index
    %8 = vector.load %arg4[%c0_6, %c0_7] : memref<128x128xf32, #tpu.memory_space<vmem>>, vector<128x128xf32>
    %c0_8 = arith.constant 0 : index
    %c0_9 = arith.constant 0 : index
    %9 = vector.load %arg5[%c0_8, %c0_9] : memref<1x128xf32, #tpu.memory_space<vmem>>, vector<1x128xf32>
    %cst_10 = arith.constant dense<0.000000e+00> : vector<8x128xf32>
    %10 = tpu.matmul %7, %8, %cst_10 {dimension_numbers = #tpu.dot_dimension_numbers<[1], [0], [0], [1], [0, 0, 1, 1], [], []>} : vector<8x128xf32>, vector<128x128xf32>, vector<8x128xf32> -> vector<8x128xf32>
    %11 = vector.broadcast %9 : vector<1x128xf32> to vector<8x128xf32>
    %12 = arith.addf %10, %11 : vector<8x128xf32>
    %cst_11 = arith.constant 0.000000e+00 : f32
    %13 = vector.broadcast %cst_11 : f32 to vector<8x128xf32>
    %14 = arith.maximumf %12, %13 : vector<8x128xf32>
    %c0_12 = arith.constant 0 : index
    %c0_13 = arith.constant 0 : index
    %15 = vector.load %arg6[%c0_12, %c0_13] : memref<128x128xf32, #tpu.memory_space<vmem>>, vector<128x128xf32>
    %c0_14 = arith.constant 0 : index
    %c0_15 = arith.constant 0 : index
    %16 = vector.load %arg7[%c0_14, %c0_15] : memref<1x128xf32, #tpu.memory_space<vmem>>, vector<1x128xf32>
    %cst_16 = arith.constant dense<0.000000e+00> : vector<8x128xf32>
    %17 = tpu.matmul %14, %15, %cst_16 {dimension_numbers = #tpu.dot_dimension_numbers<[1], [0], [0], [1], [0, 0, 1, 1], [], []>} : vector<8x128xf32>, vector<128x128xf32>, vector<8x128xf32> -> vector<8x128xf32>
    %18 = vector.broadcast %16 : vector<1x128xf32> to vector<8x128xf32>
    %19 = arith.addf %17, %18 : vector<8x128xf32>
    %c0_17 = arith.constant 0 : index
    %c0_18 = arith.constant 0 : index
    %20 = vector.load %arg8[%c0_17, %c0_18] : memref<8x128xf32, #tpu.memory_space<vmem>>, vector<8x128xf32>
    tpu.vector_store %arg8[%c0_17, %c0_18], %19 {strides = array<i32>} : memref<8x128xf32, #tpu.memory_space<vmem>>, vector<8x128xf32>,
    return
  }
  func.func @transform_0(%arg0: i32) -> (i32, i32) {
    %c0_i32 = arith.constant 0 : i32
    %c0_i32_0 = arith.constant 0 : i32
    return %arg0, %c0_i32 : i32, i32
  }
  func.func @transform_1(%arg0: i32) -> (i32, i32) {
    %c0_i32 = arith.constant 0 : i32
    %c0_i32_0 = arith.constant 0 : i32
    %c0_i32_1 = arith.constant 0 : i32
    return %c0_i32, %c0_i32_0 : i32, i32
  }
  func.func @transform_2(%arg0: i32) -> (i32, i32) {
    %c0_i32 = arith.constant 0 : i32
    %c0_i32_0 = arith.constant 0 : i32
    %c0_i32_1 = arith.constant 0 : i32
    return %c0_i32, %c0_i32_0 : i32, i32
  }
  func.func @transform_3(%arg0: i32) -> (i32, i32) {
    %c0_i32 = arith.constant 0 : i32
    %c0_i32_0 = arith.constant 0 : i32
    %c0_i32_1 = arith.constant 0 : i32
    return %c0_i32, %c0_i32_0 : i32, i32
  }
  func.func @transform_4(%arg0: i32) -> (i32, i32) {
    %c0_i32 = arith.constant 0 : i32
    %c0_i32_0 = arith.constant 0 : i32
    %c0_i32_1 = arith.constant 0 : i32
    return %c0_i32, %c0_i32_0 : i32, i32
  }
  func.func @transform_5(%arg0: i32) -> (i32, i32) {
    %c0_i32 = arith.constant 0 : i32
    %c0_i32_0 = arith.constant 0 : i32
    %c0_i32_1 = arith.constant 0 : i32
    return %c0_i32, %c0_i32_0 : i32, i32
  }
  func.func @transform_6(%arg0: i32) -> (i32, i32) {
    %c0_i32 = arith.constant 0 : i32
    %c0_i32_0 = arith.constant 0 : i32
    %c0_i32_1 = arith.constant 0 : i32
    return %c0_i32, %c0_i32_0 : i32, i32
  }
  func.func @transform_7(%arg0: i32) -> (i32, i32) {
    %c0_i32 = arith.constant 0 : i32
    %c0_i32_0 = arith.constant 0 : i32
    return %arg0, %c0_i32 : i32, i32
  }
}

module attributes {stable_mosaic.version = 11 : i64} {
  func.func @_fused_mlp_kernel(%arg0: i32, %arg1: memref<8x128xf32, #tpu.memory_space<vmem>>, %arg2: memref<128x128xf32, #tpu.memory_space<vmem>>, %arg3: memref<1x128xf32, #tpu.memory_space<vmem>>, %arg4: memref<128x128xf32, #tpu.memory_space<vmem>>, %arg5: memref<1x128xf32, #tpu.memory_space<vmem>>, %arg6: memref<128x128xf32, #tpu.memory_space<vmem>>, %arg7: memref<1x128xf32, #tpu.memory_space<vmem>>, %arg8: memref<8x128xf32, #tpu.memory_space<vmem>>) attributes {dimension_semantics = [#tpu.dimension_semantics<parallel>], iteration_bounds = array<i64: 1>, scalar_prefetch = 0 : i64, scratch_operands = 0 : i64, tpu.core_type = #tpu.core_type<tc>, window_params = [{transform_indices = @transform_0, window_bounds = array<i64: 8, 128>}, {pipeline_mode = #tpu.pipeline_mode<synchronous>, transform_indices = @transform_1, window_bounds = array<i64: 128, 128>}, {pipeline_mode = #tpu.pipeline_mode<synchronous>, transform_indices = @transform_2, window_bounds = array<i64: 1, 128>}, {pipeline_mode = #tpu.pipeline_mode<synchronous>, transform_indices = @transform_3, window_bounds = array<i64: 128, 128>}, {pipeline_mode = #tpu.pipeline_mode<synchronous>, transform_indices = @transform_4, window_bounds = array<i64: 1, 128>}, {pipeline_mode = #tpu.pipeline_mode<synchronous>, transform_indices = @transform_5, window_bounds = array<i64: 128, 128>}, {pipeline_mode = #tpu.pipeline_mode<synchronous>, transform_indices = @transform_6, window_bounds = array<i64: 1, 128>}, {transform_indices = @transform_7, window_bounds = array<i64: 8, 128>}]} {
    %c0 = arith.constant 0 : index
    %c0_0 = arith.constant 0 : index
    %0 = vector.load %arg1[%c0, %c0_0] : memref<8x128xf32, #tpu.memory_space<vmem>>, vector<8x128xf32>
    %c0_1 = arith.constant 0 : index
    %c0_2 = arith.constant 0 : index
    %1 = vector.load %arg2[%c0_1, %c0_2] : memref<128x128xf32, #tpu.memory_space<vmem>>, vector<128x128xf32>
    %c0_3 = arith.constant 0 : index
    %c0_4 = arith.constant 0 : index
    %2 = vector.load %arg3[%c0_3, %c0_4] : memref<1x128xf32, #tpu.memory_space<vmem>>, vector<1x128xf32>
    %cst = arith.constant dense<0.000000e+00> : vector<8x128xf32>
    %3 = tpu.matmul %0, %1, %cst {dimension_numbers = #tpu.dot_dimension_numbers<[1], [0], [0], [1], [0, 0, 1, 1], [], []>} : vector<8x128xf32>, vector<128x128xf32>, vector<8x128xf32> -> vector<8x128xf32>
    %4 = vector.broadcast %2 : vector<1x128xf32> to vector<8x128xf32>
    %5 = arith.addf %3, %4 : vector<8x128xf32>
    %cst_5 = arith.constant 0.000000e+00 : f32
    %6 = vector.broadcast %cst_5 : f32 to vector<8x128xf32>
    %7 = arith.maximumf %5, %6 : vector<8x128xf32>
    %c0_6 = arith.constant 0 : index
    %c0_7 = arith.constant 0 : index
    %8 = vector.load %arg4[%c0_6, %c0_7] : memref<128x128xf32, #tpu.memory_space<vmem>>, vector<128x128xf32>
    %c0_8 = arith.constant 0 : index
    %c0_9 = arith.constant 0 : index
    %9 = vector.load %arg5[%c0_8, %c0_9] : memref<1x128xf32, #tpu.memory_space<vmem>>, vector<1x128xf32>
    %cst_10 = arith.constant dense<0.000000e+00> : vector<8x128xf32>
    %10 = tpu.matmul %7, %8, %cst_10 {dimension_numbers = #tpu.dot_dimension_numbers<[1], [0], [0], [1], [0, 0, 1, 1], [], []>} : vector<8x128xf32>, vector<128x128xf32>, vector<8x128xf32> -> vector<8x128xf32>
    %11 = vector.broadcast %9 : vector<1x128xf32> to vector<8x128xf32>
    %12 = arith.addf %10, %11 : vector<8x128xf32>
    %cst_11 = arith.constant 0.000000e+00 : f32
    %13 = vector.broadcast %cst_11 : f32 to vector<8x128xf32>
    %14 = arith.maximumf %12, %13 : vector<8x128xf32>
    %c0_12 = arith.constant 0 : index
    %c0_13 = arith.constant 0 : index
    %15 = vector.load %arg6[%c0_12, %c0_13] : memref<128x128xf32, #tpu.memory_space<vmem>>, vector<128x128xf32>
    %c0_14 = arith.constant 0 : index
    %c0_15 = arith.constant 0 : index
    %16 = vector.load %arg7[%c0_14, %c0_15] : memref<1x128xf32, #tpu.memory_space<vmem>>, vector<1x128xf32>
    %cst_16 = arith.constant dense<0.000000e+00> : vector<8x128xf32>
    %17 = tpu.matmul %14, %15, %cst_16 {dimension_numbers = #tpu.dot_dimension_numbers<[1], [0], [0], [1], [0, 0, 1, 1], [], []>} : vector<8x128xf32>, vector<128x128xf32>, vector<8x128xf32> -> vector<8x128xf32>
    %18 = vector.broadcast %16 : vector<1x128xf32> to vector<8x128xf32>
    %19 = arith.addf %17, %18 : vector<8x128xf32>
    %c0_17 = arith.constant 0 : index
    %c0_18 = arith.constant 0 : index
    %20 = vector.load %arg8[%c0_17, %c0_18] : memref<8x128xf32, #tpu.memory_space<vmem>>, vector<8x128xf32>
    tpu.vector_store %arg8[%c0_17, %c0_18], %19 {strides = array<i32>} : memref<8x128xf32, #tpu.memory_space<vmem>>, vector<8x128xf32>,
    return
  }
  func.func @transform_0(%arg0: i32) -> (i32, i32) {
    %c0_i32 = arith.constant 0 : i32
    %c0_i32_0 = arith.constant 0 : i32
    return %arg0, %c0_i32 : i32, i32
  }
  func.func @transform_1(%arg0: i32) -> (i32, i32) {
    %c0_i32 = arith.constant 0 : i32
    %c0_i32_0 = arith.constant 0 : i32
    %c0_i32_1 = arith.constant 0 : i32
    return %c0_i32, %c0_i32_0 : i32, i32
  }
  func.func @transform_2(%arg0: i32) -> (i32, i32) {
    %c0_i32 = arith.constant 0 : i32
    %c0_i32_0 = arith.constant 0 : i32
    %c0_i32_1 = arith.constant 0 : i32
    return %c0_i32, %c0_i32_0 : i32, i32
  }
  func.func @transform_3(%arg0: i32) -> (i32, i32) {
    %c0_i32 = arith.constant 0 : i32
    %c0_i32_0 = arith.constant 0 : i32
    %c0_i32_1 = arith.constant 0 : i32
    return %c0_i32, %c0_i32_0 : i32, i32
  }
  func.func @transform_4(%arg0: i32) -> (i32, i32) {
    %c0_i32 = arith.constant 0 : i32
    %c0_i32_0 = arith.constant 0 : i32
    %c0_i32_1 = arith.constant 0 : i32
    return %c0_i32, %c0_i32_0 : i32, i32
  }
  func.func @transform_5(%arg0: i32) -> (i32, i32) {
    %c0_i32 = arith.constant 0 : i32
    %c0_i32_0 = arith.constant 0 : i32
    %c0_i32_1 = arith.constant 0 : i32
    return %c0_i32, %c0_i32_0 : i32, i32
  }
  func.func @transform_6(%arg0: i32) -> (i32, i32) {
    %c0_i32 = arith.constant 0 : i32
    %c0_i32_0 = arith.constant 0 : i32
    %c0_i32_1 = arith.constant 0 : i32
    return %c0_i32, %c0_i32_0 : i32, i32
  }
  func.func @transform_7(%arg0: i32) -> (i32, i32) {
    %c0_i32 = arith.constant 0 : i32
    %c0_i32_0 = arith.constant 0 : i32
    return %arg0, %c0_i32 : i32, i32
  }
}

</mosaic_0001>

<bundles_post_ra>
// kernel: _forward_impl.1
= control target key start
LH: loop header
LB: loop body
LE: loop exit
PB: predicated region body
PF: predicated region fallthrough
CT: control target
= control target key end

     0   :  { %12 = vsyncpa [#allocation3], 0  ;;  %s397_s0 = inlined_call_operand.vmem [shape: f32[8,128], index: 0, kind: input, shape index: {}]   ;;  %s398_s1 = inlined_call_operand.hbm [shape: f32[128,128], index: 1, kind: input, shape index: {}]   ;;  %s399_s2 = inlined_call_operand.vmem [shape: f32[1,128], index: 2, kind: input, shape index: {}]   ;;  %s400_s3 = inlined_call_operand.hbm [shape: f32[128,128], index: 3, kind: input, shape index: {}]   ;;  %s401_s4 = inlined_call_operand.vmem [shape: f32[1,128], index: 4, kind: input, shape index: {}]   ;;  %s402_s5 = inlined_call_operand.hbm [shape: f32[128,128], index: 5, kind: input, shape index: {}]   ;;  %s403_s6 = inlined_call_operand.vmem [shape: f32[1,128], index: 6, kind: input, shape index: {}]   ;;  %s404_s7 = inlined_call_operand.hbm [shape: f32[8,128], index: 7, kind: output, shape index: {}]  }
   0x1   :  { %13 = vsyncpa [#allocation6], 0 }
   0x2   :  { %14 = vsyncpa [#allocation4], 0  ;;  %s36_s26 = sshll.u32 %s400_s3, 4  ;;  %s327_s27 = smov [#allocation5]   ;;  %s37_s26 = int_to_ptr.hbm [resolvable:$true] %s36_s26 }
   0x3   :  { %s38_s28 = sshll.u32 %s327_s27, 4  ;;  %s21_s8 = sshll.u32 %s398_s1, 4  ;;  %s39_s28 = int_to_ptr.vmem [resolvable:$true] %s38_s28  ;;  %s22_s8 = int_to_ptr.hbm [resolvable:$true] %s21_s8 }
   0x4   :  { %s328_s9 = smov 128   ;;  %s329_s10 = smov 8  }
   0x5   :  { %44 = dma.hbm_to_vmem [thread:$0]  %s37_s26, 2048, %s39_s28, [#allocation6], %s328_s9, %s328_s9, %s329_s10  }
   0x6   :  { %s330_s11 = smov [#allocation2]   ;;  %s51_s15 = sshll.u32 %s402_s5, 4  ;;  %s52_s15 = int_to_ptr.hbm [resolvable:$true] %s51_s15 }
   0x7   :  { %s23_s12 = sshll.u32 %s330_s11, 4  ;;  %s331_s3 = smov [#allocation7]   ;;  %s24_s12 = int_to_ptr.vmem [resolvable:$true] %s23_s12 }
   0x8   :  { %29 = dma.hbm_to_vmem [thread:$0]  %s22_s8, 2048, %s24_s12, [#allocation3], %s328_s9, %s328_s9, %s329_s10  }
   0x9   :  { %s53_s16 = sshll.u32 %s331_s3, 4  ;;  %s54_s16 = int_to_ptr.vmem [resolvable:$true] %s53_s16 }
   0xa   :  { %59 = dma.hbm_to_vmem [thread:$0]  %s52_s15, 2048, %s54_s16, [#allocation6], %s328_s9, %s328_s9, %s329_s10  }
   0xb   :  { %321 = dma.done.wait [#allocation3], 2048  }
   0xc   :  { %322 = vsyncadd [#allocation3], 4294965248 }
   0xd   :  { %323 = dma.done.wait [#allocation6], 4096  }
   0xe   :  { %324 = vsyncadd [#allocation6], 4294963200  ;;  %v90_v0 = vld [vmem:[#allocation2 + $0x78] sm:$0xff]  ;;  %v89_v1 = vld [vmem:[#allocation2 + $0x70] sm:$0xff]  ;;  %s332_s21 = smov [#allocation8]   ;;  %s205_s25 = sshll.u32 %s404_s7, 4  ;;  %s206_s25 = int_to_ptr.hbm [resolvable:$true] %s205_s25 }
   0xf   :  { %95 = vmatpush.msra.mxu0 %v90_v0  ;;  %v88_v2 = vld [vmem:[#allocation2 + $0x68] sm:$0xff]  ;;  %v87_v3 = vld [vmem:[#allocation2 + $0x60] sm:$0xff]  ;;  %v131_v4 = vld [vmem:[#allocation5 + $0x78] sm:$0xff]  ;;  %s203_s22 = sshll.u32 %s332_s21, 4  ;;  %s204_s22 = int_to_ptr.vmem [resolvable:$true] %s203_s22 }
  0x10   :  { %v86_v5 = vld [vmem:[#allocation2 + $0x58] sm:$0xff]  ;;  %136 = vmatpush.msra.mxu1 %v131_v4  ;;  %v130_v6 = vld [vmem:[#allocation5 + $0x70] sm:$0xff]  ;;  %v129_v7 = vld [vmem:[#allocation5 + $0x68] sm:$0xff] }
  0x11   :  { %96 = vmatpush.msra.mxu0 %v89_v1  ;;  %v85_v8 = vld [vmem:[#allocation2 + $0x50] sm:$0xff]  ;;  %v128_v9 = vld [vmem:[#allocation5 + $0x60] sm:$0xff]  ;;  %v84_v10 = vld [vmem:[#allocation2 + $0x48] sm:$0xff] }
  0x12   :  { %137 = vmatpush.msra.mxu1 %v130_v6  ;;  %v127_v11 = vld [vmem:[#allocation5 + $0x58] sm:$0xff]  ;;  %v83_v12 = vld [vmem:[#allocation2 + $0x40] sm:$0xff]  ;;  %v126_v13 = vld [vmem:[#allocation5 + $0x50] sm:$0xff] }
  0x13   :  { %97 = vmatpush.msra.mxu0 %v88_v2  ;;  %v82_v14 = vld [vmem:[#allocation2 + $0x38] sm:$0xff]  ;;  %v125_v15 = vld [vmem:[#allocation5 + $0x48] sm:$0xff]  ;;  %v81_v16 = vld [vmem:[#allocation2 + $0x30] sm:$0xff] }
  0x14   :  { %138 = vmatpush.msra.mxu1 %v129_v7  ;;  %v124_v17 = vld [vmem:[#allocation5 + $0x40] sm:$0xff]  ;;  %v80_v18 = vld [vmem:[#allocation2 + $0x28] sm:$0xff]  ;;  %v123_v19 = vld [vmem:[#allocation5 + $0x38] sm:$0xff] }
  0x15   :  { %98 = vmatpush.msra.mxu0 %v87_v3  ;;  %v79_v20 = vld [vmem:[#allocation2 + $0x20] sm:$0xff]  ;;  %v122_v21 = vld [vmem:[#allocation5 + $0x30] sm:$0xff]  ;;  %v78_v22 = vld [vmem:[#allocation2 + $0x18] sm:$0xff] }
  0x16   :  { %139 = vmatpush.msra.mxu1 %v128_v9  ;;  %v121_v23 = vld [vmem:[#allocation5 + $0x28] sm:$0xff]  ;;  %v77_v24 = vld [vmem:[#allocation2 + $0x10] sm:$0xff]  ;;  %v120_v25 = vld [vmem:[#allocation5 + $0x20] sm:$0xff] }
  0x17   :  { %99 = vmatpush.msra.mxu0 %v86_v5  ;;  %v76_v26 = vld [vmem:[#allocation2 + $0x8] sm:$0xff]  ;;  %v119_v27 = vld [vmem:[#allocation5 + $0x18] sm:$0xff]  ;;  %v75_v28 = vld [vmem:[#allocation2] sm:$0xff] }
  0x18   :  { %140 = vmatpush.msra.mxu1 %v127_v11  ;;  %v74_v29 = vld [vmem:[%s397_s0] sm:$0xff]  ;;  %v118_v30 = vld [vmem:[#allocation5 + $0x10] sm:$0xff]  ;;  %v117_v31 = vld [vmem:[#allocation5 + $0x8] sm:$0xff] }
  0x19   :  { %100 = vmatpush.msra.mxu0 %v85_v8  ;;  %v116_v32 = vld [vmem:[#allocation5] sm:$0xff]  ;;  %v172_v33 = vld [vmem:[#allocation7 + $0x78] sm:$0xff]  ;;  %v171_v34 = vld [vmem:[#allocation7 + $0x70] sm:$0xff] }
  0x1a   :  { %141 = vmatpush.msra.mxu1 %v126_v13  ;;  %177 = vmatpush.msra.mxu2 %v172_v33  ;;  %v170_v35 = vld [vmem:[#allocation7 + $0x68] sm:$0xff]  ;;  %v169_v36 = vld [vmem:[#allocation7 + $0x60] sm:$0xff]  ;;  %v168_v37 = vld [vmem:[#allocation7 + $0x58] sm:$0xff] }
  0x1b   :  { %101 = vmatpush.msra.mxu0 %v84_v10  ;;  %v167_v38 = vld [vmem:[#allocation7 + $0x50] sm:$0xff]  ;;  %v166_v39 = vld [vmem:[#allocation7 + $0x48] sm:$0xff]  ;;  %v165_v40 = vld [vmem:[#allocation7 + $0x40] sm:$0xff] }
  0x1c   :  { %142 = vmatpush.msra.mxu1 %v125_v15  ;;  %178 = vmatpush.msra.mxu2 %v171_v34  ;;  %v164_v41 = vld [vmem:[#allocation7 + $0x38] sm:$0xff]  ;;  %v163_v42 = vld [vmem:[#allocation7 + $0x30] sm:$0xff]  ;;  %v162_v43 = vld [vmem:[#allocation7 + $0x28] sm:$0xff] }
  0x1d   :  { %102 = vmatpush.msra.mxu0 %v83_v12  ;;  %v161_v44 = vld [vmem:[#allocation7 + $0x20] sm:$0xff]  ;;  %v160_v45 = vld [vmem:[#allocation7 + $0x18] sm:$0xff]  ;;  %v159_v50 = vld [vmem:[#allocation7 + $0x10] sm:$0xff] }
  0x1e   :  { %143 = vmatpush.msra.mxu1 %v124_v17  ;;  %179 = vmatpush.msra.mxu2 %v170_v35  ;;  %v222_v46 = vld [vmem:[%s399_s2] ss:$0 sm:$0xff]  ;;  %v158_v51 = vld [vmem:[#allocation7 + $0x8] sm:$0xff] }
  0x1f   :  { %103 = vmatpush.msra.mxu0 %v82_v14  ;;  %v157_v52 = vld [vmem:[#allocation7] sm:$0xff] }
  0x20   :  { %144 = vmatpush.msra.mxu1 %v123_v19  ;;  %180 = vmatpush.msra.mxu2 %v169_v36  ;;  %v223_v53 = vld [vmem:[%s401_s4] ss:$0 sm:$0xff] }
  0x21   :  { %104 = vmatpush.msra.mxu0 %v81_v16  ;;  %v224_v57 = vld [vmem:[%s403_s6] ss:$0 sm:$0xff] }
  0x22   :  { %145 = vmatpush.msra.mxu1 %v122_v21  ;;  %181 = vmatpush.msra.mxu2 %v168_v37 }
  0x23   :  { %105 = vmatpush.msra.mxu0 %v80_v18 }
  0x24   :  { %146 = vmatpush.msra.mxu1 %v121_v23  ;;  %182 = vmatpush.msra.mxu2 %v167_v38 }
  0x25   :  { %106 = vmatpush.msra.mxu0 %v79_v20 }
  0x26   :  { %147 = vmatpush.msra.mxu1 %v120_v25  ;;  %183 = vmatpush.msra.mxu2 %v166_v39 }
  0x27   :  { %107 = vmatpush.msra.mxu0 %v78_v22 }
  0x28   :  { %148 = vmatpush.msra.mxu1 %v119_v27  ;;  %184 = vmatpush.msra.mxu2 %v165_v40 }
  0x29   :  { %108 = vmatpush.msra.mxu0 %v77_v24 }
  0x2a   :  { %149 = vmatpush.msra.mxu1 %v118_v30  ;;  %185 = vmatpush.msra.mxu2 %v164_v41 }
  0x2b   :  { %109 = vmatpush.msra.mxu0 %v76_v26 }
  0x2c   :  { %150 = vmatpush.msra.mxu1 %v117_v31  ;;  %186 = vmatpush.msra.mxu2 %v163_v42 }
  0x2d   :  { %110 = vmatpush.msra.mxu0 %v75_v28 }
  0x2e   :  { %111 = vmatmul.f32.vlgmr.msra.gmra.mxu0 %v74_v29  ;;  %151 = vmatpush.msra.mxu1 %v116_v32 }
  0x2f   :  { %187 = vmatpush.msra.mxu2 %v162_v43 }
  0x31   :  { %188 = vmatpush.msra.mxu2 %v161_v44 }
  0x33   :  { %189 = vmatpush.msra.mxu2 %v160_v45 }
  0x35   :  { %190 = vmatpush.msra.mxu2 %v159_v50 }
  0x37   :  { %191 = vmatpush.msra.mxu2 %v158_v51 }
  0x39   :  { %192 = vmatpush.msra.mxu2 %v157_v52 }
  0xab   :  { %v112_v47 = vpop.f32.mrf.mxu0 }
  0xac   :  { %v113_v48 = vadd.f32 %v222_v46, %v112_v47 }
  0xae   :  { %v115_v49 = vmax.f32 %v113_v48, 0.0 }
  0xb0   :  { %152 = vmatmul.f32.vlgmr.msra.gmra.mxu1 %v115_v49 }
 0x12d   :  { %v153_v54 = vpop.f32.mrf.mxu1 }
 0x12e   :  { %v154_v55 = vadd.f32 %v223_v53, %v153_v54 }
 0x130   :  { %v156_v56 = vmax.f32 %v154_v55, 0.0 }
 0x132   :  { %193 = vmatmul.f32.vlgmr.msra.gmra.mxu2 %v156_v56 }
 0x1b5   :  { %v194_v58 = vpop.f32.mrf.mxu2 }
 0x1b6   :  { %v195_v59 = vadd.f32 %v224_v57, %v194_v58 }
 0x1b8   :  { %197 = vst [vmem:[#allocation8] sm:$0xff] %v195_v59 }
 0x1b9   :  { %208 = dma.vmem_to_hbm [thread:$0]  %s204_s22, 128, %s206_s25, [#allocation4]  }
 0x1ba   :  { %325 = dma.done.wait [#allocation4], 128  }
 0x1bb   :  { %326 = vsyncadd [#allocation4], 4294967168 }
 0x1bc   :  { %213 = vsyncpa [#allocation3], 1 }
 0x1bd   :  { %214 = vsyncpa [#allocation6], 1 }
 0x1be   :  { %215 = vsyncpa [#allocation4], 1 }

// kernel: _forward_impl.1
= control target key start
LH: loop header
LB: loop body
LE: loop exit
PB: predicated region body
PF: predicated region fallthrough
CT: control target
= control target key end

     0   :  { %12 = vsyncpa [#allocation3], 0  ;;  %s397_s0 = inlined_call_operand.vmem [shape: f32[8,128], index: 0, kind: input, shape index: {}]   ;;  %s398_s1 = inlined_call_operand.hbm [shape: f32[128,128], index: 1, kind: input, shape index: {}]   ;;  %s399_s2 = inlined_call_operand.vmem [shape: f32[1,128], index: 2, kind: input, shape index: {}]   ;;  %s400_s3 = inlined_call_operand.hbm [shape: f32[128,128], index: 3, kind: input, shape index: {}]   ;;  %s401_s4 = inlined_call_operand.vmem [shape: f32[1,128], index: 4, kind: input, shape index: {}]   ;;  %s402_s5 = inlined_call_operand.hbm [shape: f32[128,128], index: 5, kind: input, shape index: {}]   ;;  %s403_s6 = inlined_call_operand.vmem [shape: f32[1,128], index: 6, kind: input, shape index: {}]   ;;  %s404_s7 = inlined_call_operand.hbm [shape: f32[8,128], index: 7, kind: output, shape index: {}]  }
   0x1   :  { %13 = vsyncpa [#allocation6], 0 }
   0x2   :  { %14 = vsyncpa [#allocation4], 0  ;;  %s36_s26 = sshll.u32 %s400_s3, 4  ;;  %s327_s27 = smov [#allocation5]   ;;  %s37_s26 = int_to_ptr.hbm [resolvable:$true] %s36_s26 }
   0x3   :  { %s38_s28 = sshll.u32 %s327_s27, 4  ;;  %s21_s8 = sshll.u32 %s398_s1, 4  ;;  %s39_s28 = int_to_ptr.vmem [resolvable:$true] %s38_s28  ;;  %s22_s8 = int_to_ptr.hbm [resolvable:$true] %s21_s8 }
   0x4   :  { %s328_s9 = smov 128   ;;  %s329_s10 = smov 8  }
   0x5   :  { %44 = dma.hbm_to_vmem [thread:$0]  %s37_s26, 2048, %s39_s28, [#allocation6], %s328_s9, %s328_s9, %s329_s10  }
   0x6   :  { %s330_s11 = smov [#allocation2]   ;;  %s51_s15 = sshll.u32 %s402_s5, 4  ;;  %s52_s15 = int_to_ptr.hbm [resolvable:$true] %s51_s15 }
   0x7   :  { %s23_s12 = sshll.u32 %s330_s11, 4  ;;  %s331_s3 = smov [#allocation7]   ;;  %s24_s12 = int_to_ptr.vmem [resolvable:$true] %s23_s12 }
   0x8   :  { %29 = dma.hbm_to_vmem [thread:$0]  %s22_s8, 2048, %s24_s12, [#allocation3], %s328_s9, %s328_s9, %s329_s10  }
   0x9   :  { %s53_s16 = sshll.u32 %s331_s3, 4  ;;  %s54_s16 = int_to_ptr.vmem [resolvable:$true] %s53_s16 }
   0xa   :  { %59 = dma.hbm_to_vmem [thread:$0]  %s52_s15, 2048, %s54_s16, [#allocation6], %s328_s9, %s328_s9, %s329_s10  }
   0xb   :  { %321 = dma.done.wait [#allocation3], 2048  }
   0xc   :  { %322 = vsyncadd [#allocation3], 4294965248 }
   0xd   :  { %323 = dma.done.wait [#allocation6], 4096  }
   0xe   :  { %324 = vsyncadd [#allocation6], 4294963200  ;;  %v90_v0 = vld [vmem:[#allocation2 + $0x78] sm:$0xff]  ;;  %v89_v1 = vld [vmem:[#allocation2 + $0x70] sm:$0xff]  ;;  %s332_s21 = smov [#allocation8]   ;;  %s205_s25 = sshll.u32 %s404_s7, 4  ;;  %s206_s25 = int_to_ptr.hbm [resolvable:$true] %s205_s25 }
   0xf   :  { %95 = vmatpush.msra.mxu0 %v90_v0  ;;  %v88_v2 = vld [vmem:[#allocation2 + $0x68] sm:$0xff]  ;;  %v87_v3 = vld [vmem:[#allocation2 + $0x60] sm:$0xff]  ;;  %v131_v4 = vld [vmem:[#allocation5 + $0x78] sm:$0xff]  ;;  %s203_s22 = sshll.u32 %s332_s21, 4  ;;  %s204_s22 = int_to_ptr.vmem [resolvable:$true] %s203_s22 }
  0x10   :  { %v86_v5 = vld [vmem:[#allocation2 + $0x58] sm:$0xff]  ;;  %136 = vmatpush.msra.mxu1 %v131_v4  ;;  %v130_v6 = vld [vmem:[#allocation5 + $0x70] sm:$0xff]  ;;  %v129_v7 = vld [vmem:[#allocation5 + $0x68] sm:$0xff] }
  0x11   :  { %96 = vmatpush.msra.mxu0 %v89_v1  ;;  %v85_v8 = vld [vmem:[#allocation2 + $0x50] sm:$0xff]  ;;  %v128_v9 = vld [vmem:[#allocation5 + $0x60] sm:$0xff]  ;;  %v84_v10 = vld [vmem:[#allocation2 + $0x48] sm:$0xff] }
  0x12   :  { %137 = vmatpush.msra.mxu1 %v130_v6  ;;  %v127_v11 = vld [vmem:[#allocation5 + $0x58] sm:$0xff]  ;;  %v83_v12 = vld [vmem:[#allocation2 + $0x40] sm:$0xff]  ;;  %v126_v13 = vld [vmem:[#allocation5 + $0x50] sm:$0xff] }
  0x13   :  { %97 = vmatpush.msra.mxu0 %v88_v2  ;;  %v82_v14 = vld [vmem:[#allocation2 + $0x38] sm:$0xff]  ;;  %v125_v15 = vld [vmem:[#allocation5 + $0x48] sm:$0xff]  ;;  %v81_v16 = vld [vmem:[#allocation2 + $0x30] sm:$0xff] }
  0x14   :  { %138 = vmatpush.msra.mxu1 %v129_v7  ;;  %v124_v17 = vld [vmem:[#allocation5 + $0x40] sm:$0xff]  ;;  %v80_v18 = vld [vmem:[#allocation2 + $0x28] sm:$0xff]  ;;  %v123_v19 = vld [vmem:[#allocation5 + $0x38] sm:$0xff] }
  0x15   :  { %98 = vmatpush.msra.mxu0 %v87_v3  ;;  %v79_v20 = vld [vmem:[#allocation2 + $0x20] sm:$0xff]  ;;  %v122_v21 = vld [vmem:[#allocation5 + $0x30] sm:$0xff]  ;;  %v78_v22 = vld [vmem:[#allocation2 + $0x18] sm:$0xff] }
  0x16   :  { %139 = vmatpush.msra.mxu1 %v128_v9  ;;  %v121_v23 = vld [vmem:[#allocation5 + $0x28] sm:$0xff]  ;;  %v77_v24 = vld [vmem:[#allocation2 + $0x10] sm:$0xff]  ;;  %v120_v25 = vld [vmem:[#allocation5 + $0x20] sm:$0xff] }
  0x17   :  { %99 = vmatpush.msra.mxu0 %v86_v5  ;;  %v76_v26 = vld [vmem:[#allocation2 + $0x8] sm:$0xff]  ;;  %v119_v27 = vld [vmem:[#allocation5 + $0x18] sm:$0xff]  ;;  %v75_v28 = vld [vmem:[#allocation2] sm:$0xff] }
  0x18   :  { %140 = vmatpush.msra.mxu1 %v127_v11  ;;  %v74_v29 = vld [vmem:[%s397_s0] sm:$0xff]  ;;  %v118_v30 = vld [vmem:[#allocation5 + $0x10] sm:$0xff]  ;;  %v117_v31 = vld [vmem:[#allocation5 + $0x8] sm:$0xff] }
  0x19   :  { %100 = vmatpush.msra.mxu0 %v85_v8  ;;  %v116_v32 = vld [vmem:[#allocation5] sm:$0xff]  ;;  %v172_v33 = vld [vmem:[#allocation7 + $0x78] sm:$0xff]  ;;  %v171_v34 = vld [vmem:[#allocation7 + $0x70] sm:$0xff] }
  0x1a   :  { %141 = vmatpush.msra.mxu1 %v126_v13  ;;  %177 = vmatpush.msra.mxu2 %v172_v33  ;;  %v170_v35 = vld [vmem:[#allocation7 + $0x68] sm:$0xff]  ;;  %v169_v36 = vld [vmem:[#allocation7 + $0x60] sm:$0xff]  ;;  %v168_v37 = vld [vmem:[#allocation7 + $0x58] sm:$0xff] }
  0x1b   :  { %101 = vmatpush.msra.mxu0 %v84_v10  ;;  %v167_v38 = vld [vmem:[#allocation7 + $0x50] sm:$0xff]  ;;  %v166_v39 = vld [vmem:[#allocation7 + $0x48] sm:$0xff]  ;;  %v165_v40 = vld [vmem:[#allocation7 + $0x40] sm:$0xff] }
  0x1c   :  { %142 = vmatpush.msra.mxu1 %v125_v15  ;;  %178 = vmatpush.msra.mxu2 %v171_v34  ;;  %v164_v41 = vld [vmem:[#allocation7 + $0x38] sm:$0xff]  ;;  %v163_v42 = vld [vmem:[#allocation7 + $0x30] sm:$0xff]  ;;  %v162_v43 = vld [vmem:[#allocation7 + $0x28] sm:$0xff] }
  0x1d   :  { %102 = vmatpush.msra.mxu0 %v83_v12  ;;  %v161_v44 = vld [vmem:[#allocation7 + $0x20] sm:$0xff]  ;;  %v160_v45 = vld [vmem:[#allocation7 + $0x18] sm:$0xff]  ;;  %v159_v50 = vld [vmem:[#allocation7 + $0x10] sm:$0xff] }
  0x1e   :  { %143 = vmatpush.msra.mxu1 %v124_v17  ;;  %179 = vmatpush.msra.mxu2 %v170_v35  ;;  %v222_v46 = vld [vmem:[%s399_s2] ss:$0 sm:$0xff]  ;;  %v158_v51 = vld [vmem:[#allocation7 + $0x8] sm:$0xff] }
  0x1f   :  { %103 = vmatpush.msra.mxu0 %v82_v14  ;;  %v157_v52 = vld [vmem:[#allocation7] sm:$0xff] }
  0x20   :  { %144 = vmatpush.msra.mxu1 %v123_v19  ;;  %180 = vmatpush.msra.mxu2 %v169_v36  ;;  %v223_v53 = vld [vmem:[%s401_s4] ss:$0 sm:$0xff] }
  0x21   :  { %104 = vmatpush.msra.mxu0 %v81_v16  ;;  %v224_v57 = vld [vmem:[%s403_s6] ss:$0 sm:$0xff] }
  0x22   :  { %145 = vmatpush.msra.mxu1 %v122_v21  ;;  %181 = vmatpush.msra.mxu2 %v168_v37 }
  0x23   :  { %105 = vmatpush.msra.mxu0 %v80_v18 }
  0x24   :  { %146 = vmatpush.msra.mxu1 %v121_v23  ;;  %182 = vmatpush.msra.mxu2 %v167_v38 }
  0x25   :  { %106 = vmatpush.msra.mxu0 %v79_v20 }
  0x26   :  { %147 = vmatpush.msra.mxu1 %v120_v25  ;;  %183 = vmatpush.msra.mxu2 %v166_v39 }
  0x27   :  { %107 = vmatpush.msra.mxu0 %v78_v22 }
  0x28   :  { %148 = vmatpush.msra.mxu1 %v119_v27  ;;  %184 = vmatpush.msra.mxu2 %v165_v40 }
  0x29   :  { %108 = vmatpush.msra.mxu0 %v77_v24 }
  0x2a   :  { %149 = vmatpush.msra.mxu1 %v118_v30  ;;  %185 = vmatpush.msra.mxu2 %v164_v41 }
  0x2b   :  { %109 = vmatpush.msra.mxu0 %v76_v26 }
  0x2c   :  { %150 = vmatpush.msra.mxu1 %v117_v31  ;;  %186 = vmatpush.msra.mxu2 %v163_v42 }
  0x2d   :  { %110 = vmatpush.msra.mxu0 %v75_v28 }
  0x2e   :  { %111 = vmatmul.f32.vlgmr.msra.gmra.mxu0 %v74_v29  ;;  %151 = vmatpush.msra.mxu1 %v116_v32 }
  0x2f   :  { %187 = vmatpush.msra.mxu2 %v162_v43 }
  0x31   :  { %188 = vmatpush.msra.mxu2 %v161_v44 }
  0x33   :  { %189 = vmatpush.msra.mxu2 %v160_v45 }
  0x35   :  { %190 = vmatpush.msra.mxu2 %v159_v50 }
  0x37   :  { %191 = vmatpush.msra.mxu2 %v158_v51 }
  0x39   :  { %192 = vmatpush.msra.mxu2 %v157_v52 }
  0xab   :  { %v112_v47 = vpop.f32.mrf.mxu0 }
  0xac   :  { %v113_v48 = vadd.f32 %v222_v46, %v112_v47 }
  0xae   :  { %v115_v49 = vmax.f32 %v113_v48, 0.0 }
  0xb0   :  { %152 = vmatmul.f32.vlgmr.msra.gmra.mxu1 %v115_v49 }
 0x12d   :  { %v153_v54 = vpop.f32.mrf.mxu1 }
 0x12e   :  { %v154_v55 = vadd.f32 %v223_v53, %v153_v54 }
 0x130   :  { %v156_v56 = vmax.f32 %v154_v55, 0.0 }
 0x132   :  { %193 = vmatmul.f32.vlgmr.msra.gmra.mxu2 %v156_v56 }
 0x1b5   :  { %v194_v58 = vpop.f32.mrf.mxu2 }
 0x1b6   :  { %v195_v59 = vadd.f32 %v224_v57, %v194_v58 }
 0x1b8   :  { %197 = vst [vmem:[#allocation8] sm:$0xff] %v195_v59 }
 0x1b9   :  { %208 = dma.vmem_to_hbm [thread:$0]  %s204_s22, 128, %s206_s25, [#allocation4]  }
 0x1ba   :  { %325 = dma.done.wait [#allocation4], 128  }
 0x1bb   :  { %326 = vsyncadd [#allocation4], 4294967168 }
 0x1bc   :  { %213 = vsyncpa [#allocation3], 1 }
 0x1bd   :  { %214 = vsyncpa [#allocation6], 1 }
 0x1be   :  { %215 = vsyncpa [#allocation4], 1 }

</bundles_post_ra>
